<compile_context>
chip_gen: v5e
topology: v5e:2x2
jax: 0.10.0
libtpu: 0.0.40
codegen_flags: <defaults>
</compile_context>

<pallas_src>
import functools

import jax
import jax.numpy as jnp
from jax.experimental import pallas as pl
from jax.experimental.pallas import tpu as pltpu


def _round_up(v, m):
    return ((v + m - 1) // m) * m


# ----------------------------------------------------------------------------
# Pallas kernels
# ----------------------------------------------------------------------------

def _conv_mm_kernel(p_ref, w_ref, b_ref, o_ref, *, relu):
    """im2col patches (TM, Kp) @ BN-folded weights (Kp, Cp), + bias (+ReLU).

    BN scale is pre-folded into the weights; both Kp and Cp are padded to a
    multiple of 128 (zero pad -> identical result), so patch loads and output
    stores are lane-dense.
    """
    acc = jnp.dot(p_ref[...], w_ref[...], preferred_element_type=jnp.float32)
    y = acc + b_ref[...]
    if relu:
        y = jnp.maximum(y, 0.0)
    o_ref[...] = y.astype(o_ref.dtype)


def _block35_tail_kernel(x_ref, b0_ref, b1_ref, w0_ref, w1_ref, b_ref, o_ref,
                         *, res_scale):
    """Fused Block35 tail: up-projection (split-K over the two branches),
    folded-BN bias, residual add and final ReLU — one kernel, no 'mixed'
    concat and no separate residual pass."""
    up = jnp.dot(b0_ref[...], w0_ref[...], preferred_element_type=jnp.float32)
    up = up + jnp.dot(b1_ref[...], w1_ref[...],
                      preferred_element_type=jnp.float32)
    up = up + b_ref[...]
    o_ref[...] = jnp.maximum(x_ref[...] + res_scale * up, 0.0)


def _head_kernel(f_ref, w_ref, t_ref, o_ref):
    """Global avg-pool -> last_linear (BN1d scale folded into W) -> bias ->
    L2 normalize (rsqrt on the EUP)."""
    pooled = jnp.mean(f_ref[...], axis=1)                        # (N, C)
    y = jnp.dot(pooled, w_ref[...],
                preferred_element_type=jnp.float32)              # (N, 512)
    y = y + t_ref[...]                                           # folded BN1d
    sq = jnp.maximum(jnp.sum(y * y, axis=-1, keepdims=True), 1e-24)
    o_ref[...] = y * jax.lax.rsqrt(sq)                           # F.normalize


# ----------------------------------------------------------------------------
# Wrappers (glue: im2col, padding, reshapes)
# ----------------------------------------------------------------------------

def _im2col(x, kh, kw, stride, pad):
    """x: (N, H, W, C) -> patches (N*OH*OW, kh*kw*C), ordered (kh, kw, C)."""
    N, H, W, C = x.shape
    if pad:
        x = jnp.pad(x, ((0, 0), (pad, pad), (pad, pad), (0, 0)))
    Hp, Wp = H + 2 * pad, W + 2 * pad
    OH = (Hp - kh) // stride + 1
    OW = (Wp - kw) // stride + 1
    cols = []
    for i in range(kh):
        for j in range(kw):
            cols.append(x[:, i:i + stride * OH:stride,
                          j:j + stride * OW:stride, :])
    patches = jnp.concatenate(cols, axis=-1)            # (N, OH, OW, kh*kw*C)
    return patches.reshape(N * OH * OW, kh * kw * C), OH, OW
    # TODO(synk): at real InceptionResnetV1 shapes (160x160), replace im2col
    # (kh*kw x HBM traffic) with kh*kw shifted matmuls accumulated in VMEM
    # scratch over a K grid axis, plus explicit vmem_limit_bytes.


def conv_bn(x, w, scale, bias, *, stride=1, pad=0, relu=True, tm=128):
    """Conv2d + folded BatchNorm2d (+ReLU) via a Pallas matmul over im2col.

    BN scale is folded into the weights host-side; patches/weights go to the
    MXU in bf16 with f32 accumulation; both the reduction dim (K) and the
    output channel dim (Cout) are zero-padded to a multiple of 128 for
    lane-dense loads/stores and the real extents are sliced back here.
    """
    N, H, W, Cin = x.shape
    KH, KW, _, Cout = w.shape
    patches, OH, OW = _im2col(x, KH, KW, stride, pad)
    M, K = patches.shape
    Mp = _round_up(M, tm)
    Kp = _round_up(K, 128)
    Cp = _round_up(Cout, 128)

    # NOTE: the Mp-M padded rows produce bias(+ReLU) garbage; they are always
    # sliced off below (out[:M]) — do not remove that slice.  The Kp-K / Cp-C
    # pads are zeros and contribute nothing to the accumulation.
    patches = jnp.pad(patches, ((0, Mp - M), (0, Kp - K))).astype(jnp.bfloat16)
    w2 = w.reshape(K, Cout) * scale[None, :]            # fold BN scale
    w2 = jnp.pad(w2, ((0, Kp - K), (0, Cp - Cout))).astype(jnp.bfloat16)
    b2 = jnp.pad(bias, (0, Cp - Cout)).reshape(1, Cp).astype(jnp.float32)

    out = pl.pallas_call(
        functools.partial(_conv_mm_kernel, relu=relu),
        out_shape=jax.ShapeDtypeStruct((Mp, Cp), jnp.float32),
        grid=(Mp // tm,),
        in_specs=[
            pl.BlockSpec((tm, Kp), lambda i: (i, 0)),
            pl.BlockSpec((Kp, Cp), lambda i: (0, 0)),
            pl.BlockSpec((1, Cp), lambda i: (0, 0)),
        ],
        out_specs=pl.BlockSpec((tm, Cp), lambda i: (i, 0)),
        compiler_params=pltpu.CompilerParams(
            dimension_semantics=("parallel",)),
    )(patches, w2, b2)
    return out[:M, :Cout].reshape(N, OH, OW, Cout)


def block35_tail(x, b0, b1, w_up, scale_up, bias_up, *, res_scale, tm=128):
    """Fused: up = concat(b0,b1) @ W_up (split-K, no concat), + bias,
    y = relu(x + res_scale * up)."""
    N, H, W, C = x.shape
    C0 = b0.shape[-1]
    C1 = b1.shape[-1]
    M = N * H * W
    Mp = _round_up(M, tm)
    Cp = _round_up(C, 128)

    xf = jnp.pad(x.reshape(M, C), ((0, Mp - M), (0, Cp - C)))
    b0f = jnp.pad(b0.reshape(M, C0), ((0, Mp - M), (0, 0))).astype(jnp.bfloat16)
    b1f = jnp.pad(b1.reshape(M, C1), ((0, Mp - M), (0, 0))).astype(jnp.bfloat16)

    wf = w_up.reshape(C0 + C1, C) * scale_up[None, :]   # fold BN scale
    wf = jnp.pad(wf, ((0, 0), (0, Cp - C)))
    w0 = wf[:C0].astype(jnp.bfloat16)
    w1 = wf[C0:].astype(jnp.bfloat16)
    bvec = jnp.pad(bias_up, (0, Cp - C)).reshape(1, Cp).astype(jnp.float32)

    out = pl.pallas_call(
        functools.partial(_block35_tail_kernel, res_scale=res_scale),
        out_shape=jax.ShapeDtypeStruct((Mp, Cp), jnp.float32),
        grid=(Mp // tm,),
        in_specs=[
            pl.BlockSpec((tm, Cp), lambda i: (i, 0)),   # skip tensor x
            pl.BlockSpec((tm, C0), lambda i: (i, 0)),   # branch0 output
            pl.BlockSpec((tm, C1), lambda i: (i, 0)),   # branch1 output
            pl.BlockSpec((C0, Cp), lambda i: (0, 0)),   # W_up rows for b0
            pl.BlockSpec((C1, Cp), lambda i: (0, 0)),   # W_up rows for b1
            pl.BlockSpec((1, Cp), lambda i: (0, 0)),    # folded BN bias
        ],
        out_specs=pl.BlockSpec((tm, Cp), lambda i: (i, 0)),
        compiler_params=pltpu.CompilerParams(
            dimension_semantics=("parallel",)),
    )(xf, b0f, b1f, w0, w1, bvec)
    return out[:M, :C].reshape(N, H, W, C)


def embedding_head(x, w, bn_scale, bn_bias):
    """avgpool_1a -> last_linear -> last_bn (folded) -> F.normalize(p=2)."""
    N, H, W, C = x.shape
    D = w.shape[1]
    f = x.reshape(N, H * W, C)
    w_eff = (w * bn_scale[None, :]).astype(jnp.float32)  # fold BN1d scale
    t = bn_bias.reshape(1, D).astype(jnp.float32)
    # TODO(synk): at real shapes (N x 3 x 3 x 1792 features / large batch),
    # tile this over a grid instead of whole-array VMEM BlockSpecs.
    return pl.pallas_call(
        _head_kernel,
        out_shape=jax.ShapeDtypeStruct((N, D), jnp.float32),
        in_specs=[pl.BlockSpec(memory_space=pltpu.MemorySpace.VMEM)] * 3,
        out_specs=pl.BlockSpec(memory_space=pltpu.MemorySpace.VMEM),
    )(f, w_eff, t)


# ----------------------------------------------------------------------------
# Parameter construction (deterministic synthetic weights, eval-mode BN folded)
# ----------------------------------------------------------------------------

def _conv_params(key, kh, kw, cin, cout):
    kw1, kb = jax.random.split(key)
    w = jax.random.normal(kw1, (kh, kw, cin, cout), jnp.float32)
    w = w / jnp.sqrt(float(kh * kw * cin))
    gamma = jnp.ones((cout,), jnp.float32)
    beta = jnp.zeros((cout,), jnp.float32)
    mean = 0.1 * jax.random.normal(kb, (cout,), jnp.float32)
    var = jnp.ones((cout,), jnp.float32)
    scale = gamma / jnp.sqrt(var + 1e-3)     # BasicConv2d BN eps = 0.001
    bias = beta - mean * scale
    return w, scale, bias


def init_params(key, emb_dim=512):
    ks = jax.random.split(key, 10)
    p = {}
    p["conv1"] = _conv_params(ks[0], 3, 3, 3, 16)      # conv2d_1a (stride 2)
    p["conv2a"] = _conv_params(ks[1], 3, 3, 16, 16)    # conv2d_2a
    p["conv2b"] = _conv_params(ks[2], 3, 3, 16, 32)    # conv2d_2b (pad 1)
    p["b35_b0"] = _conv_params(ks[3], 1, 1, 32, 8)     # Block35 branch0 1x1
    p["b35_b1a"] = _conv_params(ks[4], 1, 1, 32, 8)    # Block35 branch1 1x1
    p["b35_b1b"] = _conv_params(ks[5], 3, 3, 8, 8)     # Block35 branch1 3x3
    p["b35_up"] = _conv_params(ks[6], 1, 1, 16, 32)    # Block35 up-project
    p["linear_w"] = jax.random.normal(ks[7], (32, emb_dim),
                                      jnp.float32) / jnp.sqrt(32.0)
    gamma = jnp.ones((emb_dim,), jnp.float32)
    beta = jnp.zeros((emb_dim,), jnp.float32)
    mean = 0.1 * jax.random.normal(ks[8], (emb_dim,), jnp.float32)
    var = jnp.ones((emb_dim,), jnp.float32)
    s = gamma / jnp.sqrt(var + 1e-3)
    p["bn1d_scale"] = s
    p["bn1d_bias"] = beta - mean * s
    return p


# ----------------------------------------------------------------------------
# Forward pass (mirrors FaceNet.forward: resnet(x) -> L2-normalized embeddings)
# ----------------------------------------------------------------------------

@jax.jit
def facenet_forward(x_nchw, params):
    x = jnp.transpose(x_nchw, (0, 2, 3, 1)).astype(jnp.float32)   # NCHW->NHWC

    # Stem
    x = conv_bn(x, *params["conv1"], stride=2, pad=0)      # (N, 7, 7, 16)
    x = conv_bn(x, *params["conv2a"], stride=1, pad=0)     # (N, 5, 5, 16)
    x = conv_bn(x, *params["conv2b"], stride=1, pad=1)     # (N, 5, 5, 32)
    # TODO(synk): maxpool_3a / conv3b / conv4a / conv4b and repeat_1/2/3 +
    # mixed_6a/7a of the full InceptionResnetV1 are not replicated here.

    # Block35-style Inception-ResNet-A residual block (scale = 0.17).
    # The two 1x1 branch convs share the same input -> fused into one matmul
    # with concatenated output channels.
    w0, s0, bi0 = params["b35_b0"]
    w1a, s1a, bi1a = params["b35_b1a"]
    w_cat = jnp.concatenate([w0, w1a], axis=-1)            # (1,1,32,16)
    s_cat = jnp.concatenate([s0, s1a])
    b_cat = jnp.concatenate([bi0, bi1a])
    branches = conv_bn(x, w_cat, s_cat, b_cat, stride=1, pad=0)  # (N,5,5,16)
    b0 = branches[..., :8]                                 # branch0 output
    b1 = conv_bn(branches[..., 8:], *params["b35_b1b"],
                 stride=1, pad=1)                          # branch1 3x3
    # Fused up-projection + residual add + ReLU (no 'mixed' concat, no
    # separate residual kernel).
    w_up, s_up, bi_up = params["b35_up"]
    x = block35_tail(x, b0, b1, w_up, s_up, bi_up, res_scale=0.17)

    # Head: avgpool_1a -> (dropout: identity in eval) -> last_linear ->
    #        last_bn -> F.normalize(p=2)
    emb = embedding_head(x, params["linear_w"],
                         params["bn1d_scale"], params["bn1d_bias"])
    return emb                                             # (N, 512)


if __name__ == "__main__":
    key = jax.random.PRNGKey(0)
    k_x, k_p = jax.random.split(key)
    # small input consistent with FaceNet's RGB image input (NCHW)
    x = jax.random.normal(k_x, (2, 3, 16, 16), jnp.float32)
    params = init_params(k_p, emb_dim=512)

    emb = facenet_forward(x, params)
    emb = jax.block_until_ready(emb)

    assert emb.shape == (2, 512), emb.shape
    # embeddings are L2-normalized, as in InceptionResnetV1
    norms = jnp.linalg.norm(emb, axis=-1)
    assert bool(jnp.all(jnp.abs(norms - 1.0) < 1e-4)), norms
    print("KERNEL_OK")
</pallas_src>

<mosaic_0001>
module attributes {stable_mosaic.version = 11 : i64} {
  func.func @_conv_mm_kernel(%arg0: i32, %arg1: memref<128x128xbf16, #tpu.memory_space<vmem>>, %arg2: memref<128x128xbf16, #tpu.memory_space<vmem>>, %arg3: memref<1x128xf32, #tpu.memory_space<vmem>>, %arg4: memref<128x128xf32, #tpu.memory_space<vmem>>) attributes {dimension_semantics = [#tpu.dimension_semantics<parallel>], iteration_bounds = array<i64: 1>, scalar_prefetch = 0 : i64, scratch_operands = 0 : i64, tpu.core_type = #tpu.core_type<tc>, window_params = [{transform_indices = @transform_0, window_bounds = array<i64: 128, 128>}, {pipeline_mode = #tpu.pipeline_mode<synchronous>, transform_indices = @transform_1, window_bounds = array<i64: 128, 128>}, {pipeline_mode = #tpu.pipeline_mode<synchronous>, transform_indices = @transform_2, window_bounds = array<i64: 1, 128>}, {transform_indices = @transform_3, window_bounds = array<i64: 128, 128>}]} {
    %c0 = arith.constant 0 : index
    %c0_0 = arith.constant 0 : index
    %0 = vector.load %arg1[%c0, %c0_0] : memref<128x128xbf16, #tpu.memory_space<vmem>>, vector<128x128xbf16>
    %c0_1 = arith.constant 0 : index
    %c0_2 = arith.constant 0 : index
    %1 = vector.load %arg2[%c0_1, %c0_2] : memref<128x128xbf16, #tpu.memory_space<vmem>>, vector<128x128xbf16>
    %cst = arith.constant dense<0.000000e+00> : vector<128x128xf32>
    %2 = tpu.matmul %0, %1, %cst {dimension_numbers = #tpu.dot_dimension_numbers<[1], [0], [0], [1], [0, 0, 1, 1], [], []>} : vector<128x128xbf16>, vector<128x128xbf16>, vector<128x128xf32> -> vector<128x128xf32>
    %c0_3 = arith.constant 0 : index
    %c0_4 = arith.constant 0 : index
    %3 = vector.load %arg3[%c0_3, %c0_4] : memref<1x128xf32, #tpu.memory_space<vmem>>, vector<1x128xf32>
    %4 = vector.broadcast %3 : vector<1x128xf32> to vector<128x128xf32>
    %5 = arith.addf %2, %4 : vector<128x128xf32>
    %cst_5 = arith.constant 0.000000e+00 : f32
    %6 = vector.broadcast %cst_5 : f32 to vector<128x128xf32>
    %7 = arith.maximumf %5, %6 : vector<128x128xf32>
    %c0_6 = arith.constant 0 : index
    %c0_7 = arith.constant 0 : index
    %8 = vector.load %arg4[%c0_6, %c0_7] : memref<128x128xf32, #tpu.memory_space<vmem>>, vector<128x128xf32>
    tpu.vector_store %arg4[%c0_6, %c0_7], %7 {strides = array<i32>} : memref<128x128xf32, #tpu.memory_space<vmem>>, vector<128x128xf32>,
    return
  }
  func.func @transform_0(%arg0: i32) -> (i32, i32) {
    %c0_i32 = arith.constant 0 : i32
    %c0_i32_0 = arith.constant 0 : i32
    return %arg0, %c0_i32 : i32, i32
  }
  func.func @transform_1(%arg0: i32) -> (i32, i32) {
    %c0_i32 = arith.constant 0 : i32
    %c0_i32_0 = arith.constant 0 : i32
    %c0_i32_1 = arith.constant 0 : i32
    return %c0_i32, %c0_i32_0 : i32, i32
  }
  func.func @transform_2(%arg0: i32) -> (i32, i32) {
    %c0_i32 = arith.constant 0 : i32
    %c0_i32_0 = arith.constant 0 : i32
    %c0_i32_1 = arith.constant 0 : i32
    return %c0_i32, %c0_i32_0 : i32, i32
  }
  func.func @transform_3(%arg0: i32) -> (i32, i32) {
    %c0_i32 = arith.constant 0 : i32
    %c0_i32_0 = arith.constant 0 : i32
    return %arg0, %c0_i32 : i32, i32
  }
}

module attributes {stable_mosaic.version = 11 : i64} {
  func.func @_conv_mm_kernel(%arg0: i32, %arg1: memref<128x256xbf16, #tpu.memory_space<vmem>>, %arg2: memref<256x128xbf16, #tpu.memory_space<vmem>>, %arg3: memref<1x128xf32, #tpu.memory_space<vmem>>, %arg4: memref<128x128xf32, #tpu.memory_space<vmem>>) attributes {dimension_semantics = [#tpu.dimension_semantics<parallel>], iteration_bounds = array<i64: 1>, scalar_prefetch = 0 : i64, scratch_operands = 0 : i64, tpu.core_type = #tpu.core_type<tc>, window_params = [{transform_indices = @transform_0, window_bounds = array<i64: 128, 256>}, {pipeline_mode = #tpu.pipeline_mode<synchronous>, transform_indices = @transform_1, window_bounds = array<i64: 256, 128>}, {pipeline_mode = #tpu.pipeline_mode<synchronous>, transform_indices = @transform_2, window_bounds = array<i64: 1, 128>}, {transform_indices = @transform_3, window_bounds = array<i64: 128, 128>}]} {
    %c0 = arith.constant 0 : index
    %c0_0 = arith.constant 0 : index
    %0 = vector.load %arg1[%c0, %c0_0] : memref<128x256xbf16, #tpu.memory_space<vmem>>, vector<128x256xbf16>
    %c0_1 = arith.constant 0 : index
    %c0_2 = arith.constant 0 : index
    %1 = vector.load %arg2[%c0_1, %c0_2] : memref<256x128xbf16, #tpu.memory_space<vmem>>, vector<256x128xbf16>
    %cst = arith.constant dense<0.000000e+00> : vector<128x128xf32>
    %2 = tpu.matmul %0, %1, %cst {dimension_numbers = #tpu.dot_dimension_numbers<[1], [0], [0], [1], [0, 0, 1, 1], [], []>} : vector<128x256xbf16>, vector<256x128xbf16>, vector<128x128xf32> -> vector<128x128xf32>
    %c0_3 = arith.constant 0 : index
    %c0_4 = arith.constant 0 : index
    %3 = vector.load %arg3[%c0_3, %c0_4] : memref<1x128xf32, #tpu.memory_space<vmem>>, vector<1x128xf32>
    %4 = vector.broadcast %3 : vector<1x128xf32> to vector<128x128xf32>
    %5 = arith.addf %2, %4 : vector<128x128xf32>
    %cst_5 = arith.constant 0.000000e+00 : f32
    %6 = vector.broadcast %cst_5 : f32 to vector<128x128xf32>
    %7 = arith.maximumf %5, %6 : vector<128x128xf32>
    %c0_6 = arith.constant 0 : index
    %c0_7 = arith.constant 0 : index
    %8 = vector.load %arg4[%c0_6, %c0_7] : memref<128x128xf32, #tpu.memory_space<vmem>>, vector<128x128xf32>
    tpu.vector_store %arg4[%c0_6, %c0_7], %7 {strides = array<i32>} : memref<128x128xf32, #tpu.memory_space<vmem>>, vector<128x128xf32>,
    return
  }
  func.func @transform_0(%arg0: i32) -> (i32, i32) {
    %c0_i32 = arith.constant 0 : i32
    %c0_i32_0 = arith.constant 0 : i32
    return %arg0, %c0_i32 : i32, i32
  }
  func.func @transform_1(%arg0: i32) -> (i32, i32) {
    %c0_i32 = arith.constant 0 : i32
    %c0_i32_0 = arith.constant 0 : i32
    %c0_i32_1 = arith.constant 0 : i32
    return %c0_i32, %c0_i32_0 : i32, i32
  }
  func.func @transform_2(%arg0: i32) -> (i32, i32) {
    %c0_i32 = arith.constant 0 : i32
    %c0_i32_0 = arith.constant 0 : i32
    %c0_i32_1 = arith.constant 0 : i32
    return %c0_i32, %c0_i32_0 : i32, i32
  }
  func.func @transform_3(%arg0: i32) -> (i32, i32) {
    %c0_i32 = arith.constant 0 : i32
    %c0_i32_0 = arith.constant 0 : i32
    return %arg0, %c0_i32 : i32, i32
  }
}

module attributes {stable_mosaic.version = 11 : i64} {
  func.func @_block35_tail_kernel(%arg0: i32, %arg1: memref<128x128xf32, #tpu.memory_space<vmem>>, %arg2: memref<128x8xbf16, #tpu.memory_space<vmem>>, %arg3: memref<128x8xbf16, #tpu.memory_space<vmem>>, %arg4: memref<8x128xbf16, #tpu.memory_space<vmem>>, %arg5: memref<8x128xbf16, #tpu.memory_space<vmem>>, %arg6: memref<1x128xf32, #tpu.memory_space<vmem>>, %arg7: memref<128x128xf32, #tpu.memory_space<vmem>>) attributes {dimension_semantics = [#tpu.dimension_semantics<parallel>], iteration_bounds = array<i64: 1>, scalar_prefetch = 0 : i64, scratch_operands = 0 : i64, tpu.core_type = #tpu.core_type<tc>, window_params = [{transform_indices = @transform_0, window_bounds = array<i64: 128, 128>}, {transform_indices = @transform_1, window_bounds = array<i64: 128, 8>}, {transform_indices = @transform_2, window_bounds = array<i64: 128, 8>}, {pipeline_mode = #tpu.pipeline_mode<synchronous>, transform_indices = @transform_3, window_bounds = array<i64: 8, 128>}, {pipeline_mode = #tpu.pipeline_mode<synchronous>, transform_indices = @transform_4, window_bounds = array<i64: 8, 128>}, {pipeline_mode = #tpu.pipeline_mode<synchronous>, transform_indices = @transform_5, window_bounds = array<i64: 1, 128>}, {transform_indices = @transform_6, window_bounds = array<i64: 128, 128>}]} {
    %c0 = arith.constant 0 : index
    %c0_0 = arith.constant 0 : index
    %0 = vector.load %arg2[%c0, %c0_0] : memref<128x8xbf16, #tpu.memory_space<vmem>>, vector<128x8xbf16>
    %c0_1 = arith.constant 0 : index
    %c0_2 = arith.constant 0 : index
    %1 = vector.load %arg4[%c0_1, %c0_2] : memref<8x128xbf16, #tpu.memory_space<vmem>>, vector<8x128xbf16>
    %cst = arith.constant dense<0.000000e+00> : vector<128x128xf32>
    %2 = tpu.matmul %0, %1, %cst {dimension_numbers = #tpu.dot_dimension_numbers<[1], [0], [0], [1], [0, 0, 1, 1], [], []>} : vector<128x8xbf16>, vector<8x128xbf16>, vector<128x128xf32> -> vector<128x128xf32>
    %c0_3 = arith.constant 0 : index
    %c0_4 = arith.constant 0 : index
    %3 = vector.load %arg3[%c0_3, %c0_4] : memref<128x8xbf16, #tpu.memory_space<vmem>>, vector<128x8xbf16>
    %c0_5 = arith.constant 0 : index
    %c0_6 = arith.constant 0 : index
    %4 = vector.load %arg5[%c0_5, %c0_6] : memref<8x128xbf16, #tpu.memory_space<vmem>>, vector<8x128xbf16>
    %cst_7 = arith.constant dense<0.000000e+00> : vector<128x128xf32>
    %5 = tpu.matmul %3, %4, %cst_7 {dimension_numbers = #tpu.dot_dimension_numbers<[1], [0], [0], [1], [0, 0, 1, 1], [], []>} : vector<128x8xbf16>, vector<8x128xbf16>, vector<128x128xf32> -> vector<128x128xf32>
    %6 = arith.addf %2, %5 : vector<128x128xf32>
    %c0_8 = arith.constant 0 : index
    %c0_9 = arith.constant 0 : index
    %7 = vector.load %arg6[%c0_8, %c0_9] : memref<1x128xf32, #tpu.memory_space<vmem>>, vector<1x128xf32>
    %8 = vector.broadcast %7 : vector<1x128xf32> to vector<128x128xf32>
    %9 = arith.addf %6, %8 : vector<128x128xf32>
    %c0_10 = arith.constant 0 : index
    %c0_11 = arith.constant 0 : index
    %10 = vector.load %arg1[%c0_10, %c0_11] : memref<128x128xf32, #tpu.memory_space<vmem>>, vector<128x128xf32>
    %cst_12 = arith.constant 1.700000e-01 : f32
    %11 = vector.broadcast %cst_12 : f32 to vector<128x128xf32>
    %12 = arith.mulf %11, %9 : vector<128x128xf32>
    %13 = arith.addf %10, %12 : vector<128x128xf32>
    %cst_13 = arith.constant 0.000000e+00 : f32
    %14 = vector.broadcast %cst_13 : f32 to vector<128x128xf32>
    %15 = arith.maximumf %13, %14 : vector<128x128xf32>
    %c0_14 = arith.constant 0 : index
    %c0_15 = arith.constant 0 : index
    %16 = vector.load %arg7[%c0_14, %c0_15] : memref<128x128xf32, #tpu.memory_space<vmem>>, vector<128x128xf32>
    tpu.vector_store %arg7[%c0_14, %c0_15], %15 {strides = array<i32>} : memref<128x128xf32, #tpu.memory_space<vmem>>, vector<128x128xf32>,
    return
  }
  func.func @transform_0(%arg0: i32) -> (i32, i32) {
    %c0_i32 = arith.constant 0 : i32
    %c0_i32_0 = arith.constant 0 : i32
    return %arg0, %c0_i32 : i32, i32
  }
  func.func @transform_1(%arg0: i32) -> (i32, i32) {
    %c0_i32 = arith.constant 0 : i32
    %c0_i32_0 = arith.constant 0 : i32
    return %arg0, %c0_i32 : i32, i32
  }
  func.func @transform_2(%arg0: i32) -> (i32, i32) {
    %c0_i32 = arith.constant 0 : i32
    %c0_i32_0 = arith.constant 0 : i32
    return %arg0, %c0_i32 : i32, i32
  }
  func.func @transform_3(%arg0: i32) -> (i32, i32) {
    %c0_i32 = arith.constant 0 : i32
    %c0_i32_0 = arith.constant 0 : i32
    %c0_i32_1 = arith.constant 0 : i32
    return %c0_i32, %c0_i32_0 : i32, i32
  }
  func.func @transform_4(%arg0: i32) -> (i32, i32) {
    %c0_i32 = arith.constant 0 : i32
    %c0_i32_0 = arith.constant 0 : i32
    %c0_i32_1 = arith.constant 0 : i32
    return %c0_i32, %c0_i32_0 : i32, i32
  }
  func.func @transform_5(%arg0: i32) -> (i32, i32) {
    %c0_i32 = arith.constant 0 : i32
    %c0_i32_0 = arith.constant 0 : i32
    %c0_i32_1 = arith.constant 0 : i32
    return %c0_i32, %c0_i32_0 : i32, i32
  }
  func.func @transform_6(%arg0: i32) -> (i32, i32) {
    %c0_i32 = arith.constant 0 : i32
    %c0_i32_0 = arith.constant 0 : i32
    return %arg0, %c0_i32 : i32, i32
  }
}

module attributes {stable_mosaic.version = 11 : i64} {
  func.func @_head_kernel(%arg0: memref<2x25x32xf32, #tpu.memory_space<vmem>>, %arg1: memref<32x512xf32, #tpu.memory_space<vmem>>, %arg2: memref<1x512xf32, #tpu.memory_space<vmem>>, %arg3: memref<2x512xf32, #tpu.memory_space<vmem>>) attributes {dimension_semantics = [], scalar_prefetch = 0 : i64, scratch_operands = 0 : i64, tpu.core_type = #tpu.core_type<tc>} {
    %c0 = arith.constant 0 : index
    %c0_0 = arith.constant 0 : index
    %c0_1 = arith.constant 0 : index
    %0 = vector.load %arg0[%c0, %c0_0, %c0_1] : memref<2x25x32xf32, #tpu.memory_space<vmem>>, vector<2x25x32xf32>
    %cst = arith.constant dense<0.000000e+00> : vector<2x32xf32>
    %1 = vector.multi_reduction <add>, %0, %cst [1] : vector<2x25x32xf32> to vector<2x32xf32>
    %cst_2 = arith.constant 2.500000e+01 : f32
    %2 = vector.broadcast %cst_2 : f32 to vector<2x32xf32>
    %3 = arith.divf %1, %2 : vector<2x32xf32>
    %c0_3 = arith.constant 0 : index
    %c0_4 = arith.constant 0 : index
    %4 = vector.load %arg1[%c0_3, %c0_4] : memref<32x512xf32, #tpu.memory_space<vmem>>, vector<32x512xf32>
    %cst_5 = arith.constant dense<0.000000e+00> : vector<2x512xf32>
    %5 = tpu.matmul %3, %4, %cst_5 {dimension_numbers = #tpu.dot_dimension_numbers<[1], [0], [0], [1], [0, 0, 1, 1], [], []>} : vector<2x32xf32>, vector<32x512xf32>, vector<2x512xf32> -> vector<2x512xf32>
    %c0_6 = arith.constant 0 : index
    %c0_7 = arith.constant 0 : index
    %6 = vector.load %arg2[%c0_6, %c0_7] : memref<1x512xf32, #tpu.memory_space<vmem>>, vector<1x512xf32>
    %7 = vector.broadcast %6 : vector<1x512xf32> to vector<2x512xf32>
    %8 = arith.addf %5, %7 : vector<2x512xf32>
    %9 = arith.mulf %8, %8 : vector<2x512xf32>
    %cst_8 = arith.constant dense<0.000000e+00> : vector<2xf32>
    %10 = vector.multi_reduction <add>, %9, %cst_8 [1] : vector<2x512xf32> to vector<2xf32>
    %11 = vector.shape_cast %10 : vector<2xf32> to vector<2x1xf32>
    %cst_9 = arith.constant 1.000000e-24 : f32
    %12 = vector.broadcast %cst_9 : f32 to vector<2x1xf32>
    %13 = arith.maximumf %11, %12 : vector<2x1xf32>
    %14 = math.rsqrt %13 : vector<2x1xf32>
    %15 = vector.broadcast %14 : vector<2x1xf32> to vector<2x512xf32>
    %16 = arith.mulf %8, %15 : vector<2x512xf32>
    %c0_10 = arith.constant 0 : index
    %c0_11 = arith.constant 0 : index
    %17 = vector.load %arg3[%c0_10, %c0_11] : memref<2x512xf32, #tpu.memory_space<vmem>>, vector<2x512xf32>
    tpu.vector_store %arg3[%c0_10, %c0_11], %16 {strides = array<i32>} : memref<2x512xf32, #tpu.memory_space<vmem>>, vector<2x512xf32>,
    return
  }
}

</mosaic_0001>

<bundles_post_ra>
// kernel: facenet_forward.7
= control target key start
LH: loop header
LB: loop body
LE: loop exit
PB: predicated region body
PF: predicated region fallthrough
CT: control target
= control target key end

     0   :  { %s455_s1 = inlined_call_operand.vmem [shape: bf16[128,128], index: 1, kind: input, shape index: {}]   ;;  %s456_s2 = inlined_call_operand.vmem [shape: f32[1,128], index: 2, kind: input, shape index: {}]   ;;  %s457_s0 = inlined_call_operand.vmem [shape: bf16[128,128], index: 0, kind: input, shape index: {}]   ;;  %s458_s3 = inlined_call_operand.vmem [shape: f32[128,128], index: 3, kind: output, shape index: {}]  }
   0x1   :  { %v310_v0 = vld [vmem:[%s455_s1 + $0x38] sm:$0xff]  ;;  %v309_v1 = vld [vmem:[%s455_s1 + $0x30] sm:$0xff]  ;;  %v308_v2 = vld [vmem:[%s455_s1 + $0x28] sm:$0xff] }
   0x2   :  { %146 = vmatpush.bf16.msra.mxu0 %v310_v0  ;;  %311 = vmatpush.bf16.msra.mxu1 %v310_v0  ;;  %v307_v3 = vld [vmem:[%s455_s1 + $0x20] sm:$0xff]  ;;  %v306_v4 = vld [vmem:[%s455_s1 + $0x18] sm:$0xff]  ;;  %v305_v5 = vld [vmem:[%s455_s1 + $0x10] sm:$0xff] }
   0x3   :  { %312 = vmatpush.bf16.msra.mxu2 %v310_v0  ;;  %313 = vmatpush.bf16.msra.mxu3 %v310_v0  ;;  %v304_v6 = vld [vmem:[%s455_s1 + $0x8] sm:$0xff]  ;;  %v303_v7 = vld [vmem:[%s455_s1] sm:$0xff]  ;;  %v297_v9 = vld [vmem:[%s457_s0 + $0x10] sm:$0xff] }
   0x4   :  { %v295_v8 = vld [vmem:[%s457_s0] sm:$0xff]  ;;  %v301_v11 = vld [vmem:[%s457_s0 + $0x30] sm:$0xff]  ;;  %v296_v12 = vld [vmem:[%s457_s0 + $0x8] sm:$0xff] }
   0x5   :  { %v299_v10 = vld [vmem:[%s457_s0 + $0x20] sm:$0xff]  ;;  %v298_v13 = vld [vmem:[%s457_s0 + $0x18] sm:$0xff]  ;;  %v300_v14 = vld [vmem:[%s457_s0 + $0x28] sm:$0xff] }
   0x6   :  { %147 = vmatpush.bf16.msra.mxu0 %v309_v1  ;;  %314 = vmatpush.bf16.msra.mxu1 %v309_v1  ;;  %v302_v15 = vld [vmem:[%s457_s0 + $0x38] sm:$0xff]  ;;  %v335_v16 = vld [vmem:[%s456_s2] ss:$0 sm:$0xff] }
   0x7   :  { %315 = vmatpush.bf16.msra.mxu2 %v309_v1  ;;  %316 = vmatpush.bf16.msra.mxu3 %v309_v1 }
   0xa   :  { %148 = vmatpush.bf16.msra.mxu0 %v308_v2  ;;  %317 = vmatpush.bf16.msra.mxu1 %v308_v2 }
   0xb   :  { %318 = vmatpush.bf16.msra.mxu2 %v308_v2  ;;  %319 = vmatpush.bf16.msra.mxu3 %v308_v2 }
   0xe   :  { %149 = vmatpush.bf16.msra.mxu0 %v307_v3  ;;  %320 = vmatpush.bf16.msra.mxu1 %v307_v3 }
   0xf   :  { %321 = vmatpush.bf16.msra.mxu2 %v307_v3  ;;  %322 = vmatpush.bf16.msra.mxu3 %v307_v3 }
  0x12   :  { %150 = vmatpush.bf16.msra.mxu0 %v306_v4  ;;  %323 = vmatpush.bf16.msra.mxu1 %v306_v4 }
  0x13   :  { %324 = vmatpush.bf16.msra.mxu2 %v306_v4  ;;  %325 = vmatpush.bf16.msra.mxu3 %v306_v4 }
  0x16   :  { %151 = vmatpush.bf16.msra.mxu0 %v305_v5  ;;  %326 = vmatpush.bf16.msra.mxu1 %v305_v5 }
  0x17   :  { %327 = vmatpush.bf16.msra.mxu2 %v305_v5  ;;  %328 = vmatpush.bf16.msra.mxu3 %v305_v5 }
  0x1a   :  { %152 = vmatpush.bf16.msra.mxu0 %v304_v6  ;;  %329 = vmatpush.bf16.msra.mxu1 %v304_v6 }
  0x1b   :  { %330 = vmatpush.bf16.msra.mxu2 %v304_v6  ;;  %331 = vmatpush.bf16.msra.mxu3 %v304_v6 }
  0x1e   :  { %153 = vmatpush.bf16.msra.mxu0 %v303_v7  ;;  %332 = vmatpush.bf16.msra.mxu1 %v303_v7 }
  0x1f   :  { %333 = vmatpush.bf16.msra.mxu2 %v303_v7  ;;  %334 = vmatpush.bf16.msra.mxu3 %v303_v7 }
  0x21   :  { %154 = vmatmul.bf16.vlgmr.msra.gmra.mxu0 %v295_v8  ;;  %164 = vmatmul.bf16.vlgmr.msra.gmra.mxu1 %v297_v9 }
  0x22   :  { %174 = vmatmul.bf16.vlgmr.msra.gmra.mxu2 %v299_v10  ;;  %184 = vmatmul.bf16.vlgmr.msra.gmra.mxu3 %v301_v11 }
  0x31   :  { %159 = vmatmul.bf16.gmra.mxu0 %v296_v12  ;;  %169 = vmatmul.bf16.gmra.mxu1 %v298_v13 }
  0x32   :  { %179 = vmatmul.bf16.gmra.mxu2 %v300_v14  ;;  %189 = vmatmul.bf16.gmra.mxu3 %v302_v15 }
  0x9e   :  { %v155_v17 = vpop.f32.mrf.mxu0  ;;  %v165_v18 = vpop.f32.mrf.mxu1 }
  0x9f   :  { %v156_v19 = vadd.f32 %v335_v16, %v155_v17  ;;  %v166_v20 = vadd.f32 %v335_v16, %v165_v18 }
  0xa1   :  { %v195_v21 = vmax.f32 %v156_v19, 0.0  ;;  %v199_v22 = vmax.f32 %v166_v20, 0.0 }
  0xa3   :  { %211 = vst [vmem:[%s458_s3] sm:$0xff] %v195_v21 }
  0xa4   :  { %215 = vst [vmem:[%s458_s3 + $0x20] sm:$0xff] %v199_v22 }
  0xa5   :  { %v175_v23 = vpop.f32.mrf.mxu2  ;;  %v185_v24 = vpop.f32.mrf.mxu3 }
  0xa6   :  { %v176_v25 = vadd.f32 %v335_v16, %v175_v23  ;;  %v186_v26 = vadd.f32 %v335_v16, %v185_v24  ;;  %v157_v27 = vpop.f32.mrf.mxu0  ;;  %v167_v28 = vpop.f32.mrf.mxu1 }
  0xa7   :  { %v158_v29 = vadd.f32 %v335_v16, %v157_v27  ;;  %v168_v30 = vadd.f32 %v335_v16, %v167_v28 }
  0xa8   :  { %v203_v31 = vmax.f32 %v176_v25, 0.0  ;;  %v207_v32 = vmax.f32 %v186_v26, 0.0 }
  0xa9   :  { %v196_v33 = vmax.f32 %v158_v29, 0.0  ;;  %v200_v34 = vmax.f32 %v168_v30, 0.0 }
  0xaa   :  { %219 = vst [vmem:[%s458_s3 + $0x40] sm:$0xff] %v203_v31 }
  0xab   :  { %223 = vst [vmem:[%s458_s3 + $0x60] sm:$0xff] %v207_v32 }
  0xac   :  { %212 = vst [vmem:[%s458_s3 + $0x8] sm:$0xff] %v196_v33 }
  0xad   :  { %216 = vst [vmem:[%s458_s3 + $0x28] sm:$0xff] %v200_v34  ;;  %v177_v35 = vpop.f32.mrf.mxu2  ;;  %v187_v36 = vpop.f32.mrf.mxu3 }
  0xae   :  { %v178_v37 = vadd.f32 %v335_v16, %v177_v35  ;;  %v188_v38 = vadd.f32 %v335_v16, %v187_v36  ;;  %v160_v39 = vpop.f32.mrf.mxu0  ;;  %v170_v40 = vpop.f32.mrf.mxu1 }
  0xaf   :  { %v161_v41 = vadd.f32 %v335_v16, %v160_v39  ;;  %v171_v42 = vadd.f32 %v335_v16, %v170_v40 }
  0xb0   :  { %v204_v43 = vmax.f32 %v178_v37, 0.0  ;;  %v208_v44 = vmax.f32 %v188_v38, 0.0 }
  0xb1   :  { %v197_v45 = vmax.f32 %v161_v41, 0.0  ;;  %v201_v46 = vmax.f32 %v171_v42, 0.0 }
  0xb2   :  { %220 = vst [vmem:[%s458_s3 + $0x48] sm:$0xff] %v204_v43 }
  0xb3   :  { %224 = vst [vmem:[%s458_s3 + $0x68] sm:$0xff] %v208_v44 }
  0xb4   :  { %213 = vst [vmem:[%s458_s3 + $0x10] sm:$0xff] %v197_v45 }
  0xb5   :  { %217 = vst [vmem:[%s458_s3 + $0x30] sm:$0xff] %v201_v46  ;;  %v180_v47 = vpop.f32.mrf.mxu2  ;;  %v190_v48 = vpop.f32.mrf.mxu3 }
  0xb6   :  { %v181_v49 = vadd.f32 %v335_v16, %v180_v47  ;;  %v191_v50 = vadd.f32 %v335_v16, %v190_v48  ;;  %v162_v51 = vpop.f32.mrf.mxu0  ;;  %v172_v52 = vpop.f32.mrf.mxu1 }
  0xb7   :  { %v163_v53 = vadd.f32 %v335_v16, %v162_v51  ;;  %v173_v54 = vadd.f32 %v335_v16, %v172_v52 }
  0xb8   :  { %v205_v55 = vmax.f32 %v181_v49, 0.0  ;;  %v209_v56 = vmax.f32 %v191_v50, 0.0 }
  0xb9   :  { %v198_v57 = vmax.f32 %v163_v53, 0.0  ;;  %v202_v58 = vmax.f32 %v173_v54, 0.0 }
  0xba   :  { %221 = vst [vmem:[%s458_s3 + $0x50] sm:$0xff] %v205_v55 }
  0xbb   :  { %225 = vst [vmem:[%s458_s3 + $0x70] sm:$0xff] %v209_v56 }
  0xbc   :  { %214 = vst [vmem:[%s458_s3 + $0x18] sm:$0xff] %v198_v57 }
  0xbd   :  { %218 = vst [vmem:[%s458_s3 + $0x38] sm:$0xff] %v202_v58  ;;  %v182_v59 = vpop.f32.mrf.mxu2  ;;  %v192_v60 = vpop.f32.mrf.mxu3 }
  0xbe   :  { %v183_v61 = vadd.f32 %v335_v16, %v182_v59  ;;  %v193_v62 = vadd.f32 %v335_v16, %v192_v60 }
  0xc0   :  { %v206_v63 = vmax.f32 %v183_v61, 0.0  ;;  %v210_v0 = vmax.f32 %v193_v62, 0.0 }
  0xc2   :  { %222 = vst [vmem:[%s458_s3 + $0x58] sm:$0xff] %v206_v63 }
  0xc3   :  { %226 = vst [vmem:[%s458_s3 + $0x78] sm:$0xff] %v210_v0 }

// kernel: facenet_forward.8
= control target key start
LH: loop header
LB: loop body
LE: loop exit
PB: predicated region body
PF: predicated region fallthrough
CT: control target
= control target key end

     0   :  { %s786_s1 = inlined_call_operand.vmem [shape: bf16[256,128], index: 1, kind: input, shape index: {}]   ;;  %s787_s2 = inlined_call_operand.vmem [shape: f32[1,128], index: 2, kind: input, shape index: {}]   ;;  %s788_s0 = inlined_call_operand.vmem [shape: bf16[128,256], index: 0, kind: input, shape index: {}]   ;;  %s789_s3 = inlined_call_operand.vmem [shape: f32[128,128], index: 3, kind: output, shape index: {}]  }
   0x1   :  { %v527_v0 = vld [vmem:[%s786_s1 + $0x38] sm:$0xff]  ;;  %v526_v2 = vld [vmem:[%s786_s1 + $0x30] sm:$0xff]  ;;  %v525_v4 = vld [vmem:[%s786_s1 + $0x28] sm:$0xff] }
   0x2   :  { %v535_v1 = vld [vmem:[%s786_s1 + $0x78] sm:$0xff]  ;;  %242 = vmatpush.bf16.msra.mxu0 %v527_v0  ;;  %536 = vmatpush.bf16.msra.mxu2 %v527_v0  ;;  %v534_v3 = vld [vmem:[%s786_s1 + $0x70] sm:$0xff]  ;;  %v533_v5 = vld [vmem:[%s786_s1 + $0x68] sm:$0xff] }
   0x3   :  { %291 = vmatpush.bf16.msra.mxu1 %v535_v1  ;;  %544 = vmatpush.bf16.msra.mxu3 %v535_v1  ;;  %v524_v6 = vld [vmem:[%s786_s1 + $0x20] sm:$0xff]  ;;  %v523_v8 = vld [vmem:[%s786_s1 + $0x18] sm:$0xff]  ;;  %v522_v10 = vld [vmem:[%s786_s1 + $0x10] sm:$0xff] }
   0x4   :  { %v532_v7 = vld [vmem:[%s786_s1 + $0x60] sm:$0xff]  ;;  %v531_v9 = vld [vmem:[%s786_s1 + $0x58] sm:$0xff]  ;;  %v530_v11 = vld [vmem:[%s786_s1 + $0x50] sm:$0xff] }
   0x5   :  { %v521_v12 = vld [vmem:[%s786_s1 + $0x8] sm:$0xff]  ;;  %v520_v14 = vld [vmem:[%s786_s1] sm:$0xff]  ;;  %v386_v28 = vld [vmem:[%s788_s0 + $0x10] sm:$0xf] }
   0x6   :  { %243 = vmatpush.bf16.msra.mxu0 %v526_v2  ;;  %537 = vmatpush.bf16.msra.mxu2 %v526_v2  ;;  %v529_v13 = vld [vmem:[%s786_s1 + $0x48] sm:$0xff]  ;;  %v528_v15 = vld [vmem:[%s786_s1 + $0x40] sm:$0xff]  ;;  %v507_v29 = vld [vmem:[%s788_s0 + $0x14] sm:$0xf0] }
   0x7   :  { %292 = vmatpush.bf16.msra.mxu1 %v534_v3  ;;  %545 = vmatpush.bf16.msra.mxu3 %v534_v3  ;;  %v378_v16 = vld [vmem:[%s788_s0] sm:$0xf]  ;;  %v505_v17 = vld [vmem:[%s788_s0 + $0x4] sm:$0xf0]  ;;  %v504_v20 = vld [vmem:[%s788_s0 + $0x4] sm:$0xf]  ;;  %v387_v36 = vor.u32 %v507_v29, %v386_v28 }
   0x8   :  { %v410_v18 = vld [vmem:[%s788_s0 + $0x40] sm:$0xf]  ;;  %v513_v19 = vld [vmem:[%s788_s0 + $0x44] sm:$0xf0]  ;;  %v380_v21 = vld [vmem:[%s788_s0 + $0x8] sm:$0xf0]  ;;  %v379_v24 = vor.u32 %v505_v17, %v378_v16 }
   0x9   :  { %v512_v22 = vld [vmem:[%s788_s0 + $0x44] sm:$0xf]  ;;  %v412_v23 = vld [vmem:[%s788_s0 + $0x48] sm:$0xf0]  ;;  %v411_v25 = vor.u32 %v513_v19, %v410_v18  ;;  %v383_v26 = vor.u32 %v504_v20, %v380_v21  ;;  %v418_v30 = vld [vmem:[%s788_s0 + $0x50] sm:$0xf] }
   0xa   :  { %244 = vmatpush.bf16.msra.mxu0 %v525_v4  ;;  %538 = vmatpush.bf16.msra.mxu2 %v525_v4  ;;  %v415_v27 = vor.u32 %v512_v22, %v412_v23  ;;  %v515_v31 = vld [vmem:[%s788_s0 + $0x54] sm:$0xf0]  ;;  %v506_v32 = vld [vmem:[%s788_s0 + $0x14] sm:$0xf]  ;;  %v388_v33 = vld [vmem:[%s788_s0 + $0x18] sm:$0xf0] }
   0xb   :  { %293 = vmatpush.bf16.msra.mxu1 %v533_v5  ;;  %546 = vmatpush.bf16.msra.mxu3 %v533_v5  ;;  %v514_v34 = vld [vmem:[%s788_s0 + $0x54] sm:$0xf]  ;;  %v420_v35 = vld [vmem:[%s788_s0 + $0x58] sm:$0xf0]  ;;  %v419_v37 = vor.u32 %v515_v31, %v418_v30  ;;  %v391_v38 = vor.u32 %v506_v32, %v388_v33  ;;  %v394_v40 = vld [vmem:[%s788_s0 + $0x20] sm:$0xf] }
   0xc   :  { %v423_v39 = vor.u32 %v514_v34, %v420_v35  ;;  %v509_v41 = vld [vmem:[%s788_s0 + $0x24] sm:$0xf0]  ;;  %v426_v42 = vld [vmem:[%s788_s0 + $0x60] sm:$0xf]  ;;  %v508_v44 = vld [vmem:[%s788_s0 + $0x24] sm:$0xf] }
   0xd   :  { %v517_v43 = vld [vmem:[%s788_s0 + $0x64] sm:$0xf0]  ;;  %v396_v45 = vld [vmem:[%s788_s0 + $0x28] sm:$0xf0]  ;;  %v516_v46 = vld [vmem:[%s788_s0 + $0x64] sm:$0xf]  ;;  %v395_v48 = vor.u32 %v509_v41, %v394_v40 }
   0xe   :  { %245 = vmatpush.bf16.msra.mxu0 %v524_v6  ;;  %539 = vmatpush.bf16.msra.mxu2 %v524_v6  ;;  %v428_v47 = vld [vmem:[%s788_s0 + $0x68] sm:$0xf0]  ;;  %v427_v49 = vor.u32 %v517_v43, %v426_v42  ;;  %v399_v50 = vor.u32 %v508_v44, %v396_v45  ;;  %v402_v52 = vld [vmem:[%s788_s0 + $0x30] sm:$0xf]  ;;  %v511_v53 = vld [vmem:[%s788_s0 + $0x34] sm:$0xf0] }
   0xf   :  { %294 = vmatpush.bf16.msra.mxu1 %v532_v7  ;;  %547 = vmatpush.bf16.msra.mxu3 %v532_v7  ;;  %v431_v51 = vor.u32 %v516_v46, %v428_v47  ;;  %v434_v54 = vld [vmem:[%s788_s0 + $0x70] sm:$0xf]  ;;  %v519_v55 = vld [vmem:[%s788_s0 + $0x74] sm:$0xf0]  ;;  %v510_v56 = vld [vmem:[%s788_s0 + $0x34] sm:$0xf]  ;;  %v403_v60 = vor.u32 %v511_v53, %v402_v52 }
  0x10   :  { %v404_v57 = vld [vmem:[%s788_s0 + $0x38] sm:$0xf0]  ;;  %v518_v58 = vld [vmem:[%s788_s0 + $0x74] sm:$0xf]  ;;  %v435_v61 = vor.u32 %v519_v55, %v434_v54  ;;  %v720_v0 = vld [vmem:[%s787_s2] ss:$0 sm:$0xff] }
  0x11   :  { %v436_v59 = vld [vmem:[%s788_s0 + $0x78] sm:$0xf0]  ;;  %v407_v62 = vor.u32 %v510_v56, %v404_v57 }
  0x12   :  { %246 = vmatpush.bf16.msra.mxu0 %v523_v8  ;;  %540 = vmatpush.bf16.msra.mxu2 %v523_v8  ;;  %v439_v63 = vor.u32 %v518_v58, %v436_v59 }
  0x13   :  { %295 = vmatpush.bf16.msra.mxu1 %v531_v9  ;;  %548 = vmatpush.bf16.msra.mxu3 %v531_v9 }
  0x16   :  { %247 = vmatpush.bf16.msra.mxu0 %v522_v10  ;;  %541 = vmatpush.bf16.msra.mxu2 %v522_v10 }
  0x17   :  { %296 = vmatpush.bf16.msra.mxu1 %v530_v11  ;;  %549 = vmatpush.bf16.msra.mxu3 %v530_v11 }
  0x1a   :  { %248 = vmatpush.bf16.msra.mxu0 %v521_v12  ;;  %542 = vmatpush.bf16.msra.mxu2 %v521_v12 }
  0x1b   :  { %297 = vmatpush.bf16.msra.mxu1 %v529_v13  ;;  %550 = vmatpush.bf16.msra.mxu3 %v529_v13 }
  0x1e   :  { %249 = vmatpush.bf16.msra.mxu0 %v520_v14  ;;  %543 = vmatpush.bf16.msra.mxu2 %v520_v14 }
  0x1f   :  { %298 = vmatpush.bf16.msra.mxu1 %v528_v15  ;;  %551 = vmatpush.bf16.msra.mxu3 %v528_v15 }
  0x21   :  { %250 = vmatmul.bf16.vlgmr.msra.gmra.mxu0 %v379_v24  ;;  %270 = vmatmul.bf16.vlgmr.msra.gmra.mxu2 %v411_v25 }
  0x22   :  { %299 = vmatmul.bf16.vlgmr.msra.gmra.mxu1 %v383_v26  ;;  %319 = vmatmul.bf16.vlgmr.msra.gmra.mxu3 %v415_v27 }
  0x31   :  { %255 = vmatmul.bf16.gmra.mxu0 %v387_v36  ;;  %275 = vmatmul.bf16.gmra.mxu2 %v419_v37 }
  0x32   :  { %304 = vmatmul.bf16.gmra.mxu1 %v391_v38  ;;  %324 = vmatmul.bf16.gmra.mxu3 %v423_v39 }
  0x41   :  { %260 = vmatmul.bf16.gmra.mxu0 %v395_v48  ;;  %280 = vmatmul.bf16.gmra.mxu2 %v427_v49 }
  0x42   :  { %309 = vmatmul.bf16.gmra.mxu1 %v399_v50  ;;  %329 = vmatmul.bf16.gmra.mxu3 %v431_v51 }
  0x51   :  { %265 = vmatmul.bf16.gmra.mxu0 %v403_v60  ;;  %285 = vmatmul.bf16.gmra.mxu2 %v435_v61 }
  0x52   :  { %314 = vmatmul.bf16.gmra.mxu1 %v407_v62  ;;  %334 = vmatmul.bf16.gmra.mxu3 %v439_v63 }
  0x9e   :  { %v251_v1 = vpop.f32.mrf.mxu0 }
  0x9f   :  { %v252_v2 = vadd.f32 %v720_v0, %v251_v1  ;;  %v300_v3 = vpop.f32.mrf.mxu1 }
  0xa1   :  { %v301_v4 = vadd.f32 %v300_v3, %v252_v2 }
  0xa3   :  { %v340_v5 = vmax.f32 %v301_v4, 0.0 }
  0xa4   :  { %v271_v6 = vpop.f32.mrf.mxu2 }
  0xa5   :  { %356 = vst [vmem:[%s789_s3] sm:$0xff] %v340_v5  ;;  %v272_v7 = vadd.f32 %v720_v0, %v271_v6  ;;  %v320_v8 = vpop.f32.mrf.mxu3 }
  0xa6   :  { %v253_v9 = vpop.f32.mrf.mxu0 }
  0xa7   :  { %v321_v10 = vadd.f32 %v320_v8, %v272_v7  ;;  %v254_v11 = vadd.f32 %v720_v0, %v253_v9  ;;  %v302_v12 = vpop.f32.mrf.mxu1 }
  0xa9   :  { %v348_v13 = vmax.f32 %v321_v10, 0.0  ;;  %v303_v14 = vadd.f32 %v302_v12, %v254_v11 }
  0xab   :  { %364 = vst [vmem:[%s789_s3 + $0x40] sm:$0xff] %v348_v13  ;;  %v341_v15 = vmax.f32 %v303_v14, 0.0 }
  0xac   :  { %v273_v16 = vpop.f32.mrf.mxu2 }
  0xad   :  { %357 = vst [vmem:[%s789_s3 + $0x8] sm:$0xff] %v341_v15  ;;  %v274_v17 = vadd.f32 %v720_v0, %v273_v16  ;;  %v322_v18 = vpop.f32.mrf.mxu3 }
  0xae   :  { %v256_v19 = vpop.f32.mrf.mxu0 }
  0xaf   :  { %v323_v20 = vadd.f32 %v322_v18, %v274_v17  ;;  %v257_v21 = vadd.f32 %v720_v0, %v256_v19  ;;  %v305_v22 = vpop.f32.mrf.mxu1 }
  0xb1   :  { %v349_v23 = vmax.f32 %v323_v20, 0.0  ;;  %v306_v24 = vadd.f32 %v305_v22, %v257_v21 }
  0xb3   :  { %365 = vst [vmem:[%s789_s3 + $0x48] sm:$0xff] %v349_v23  ;;  %v342_v25 = vmax.f32 %v306_v24, 0.0 }
  0xb4   :  { %v276_v26 = vpop.f32.mrf.mxu2 }
  0xb5   :  { %358 = vst [vmem:[%s789_s3 + $0x10] sm:$0xff] %v342_v25  ;;  %v277_v27 = vadd.f32 %v720_v0, %v276_v26  ;;  %v325_v28 = vpop.f32.mrf.mxu3 }
  0xb6   :  { %v258_v29 = vpop.f32.mrf.mxu0 }
  0xb7   :  { %v326_v30 = vadd.f32 %v325_v28, %v277_v27  ;;  %v259_v31 = vadd.f32 %v720_v0, %v258_v29  ;;  %v307_v32 = vpop.f32.mrf.mxu1 }
  0xb9   :  { %v350_v33 = vmax.f32 %v326_v30, 0.0  ;;  %v308_v34 = vadd.f32 %v307_v32, %v259_v31 }
  0xbb   :  { %366 = vst [vmem:[%s789_s3 + $0x50] sm:$0xff] %v350_v33  ;;  %v343_v35 = vmax.f32 %v308_v34, 0.0 }
  0xbc   :  { %v278_v36 = vpop.f32.mrf.mxu2 }
  0xbd   :  { %359 = vst [vmem:[%s789_s3 + $0x18] sm:$0xff] %v343_v35  ;;  %v279_v37 = vadd.f32 %v720_v0, %v278_v36  ;;  %v327_v38 = vpop.f32.mrf.mxu3 }
  0xbe   :  { %v261_v39 = vpop.f32.mrf.mxu0 }
  0xbf   :  { %v328_v40 = vadd.f32 %v327_v38, %v279_v37  ;;  %v262_v41 = vadd.f32 %v720_v0, %v261_v39  ;;  %v310_v42 = vpop.f32.mrf.mxu1 }
  0xc1   :  { %v351_v43 = vmax.f32 %v328_v40, 0.0  ;;  %v311_v44 = vadd.f32 %v310_v42, %v262_v41 }
  0xc3   :  { %367 = vst [vmem:[%s789_s3 + $0x58] sm:$0xff] %v351_v43  ;;  %v344_v45 = vmax.f32 %v311_v44, 0.0 }
  0xc4   :  { %v281_v46 = vpop.f32.mrf.mxu2 }
  0xc5   :  { %360 = vst [vmem:[%s789_s3 + $0x20] sm:$0xff] %v344_v45  ;;  %v282_v47 = vadd.f32 %v720_v0, %v281_v46  ;;  %v330_v48 = vpop.f32.mrf.mxu3 }
  0xc6   :  { %v263_v49 = vpop.f32.mrf.mxu0 }
  0xc7   :  { %v331_v50 = vadd.f32 %v330_v48, %v282_v47  ;;  %v264_v51 = vadd.f32 %v720_v0, %v263_v49  ;;  %v312_v52 = vpop.f32.mrf.mxu1 }
  0xc9   :  { %v352_v53 = vmax.f32 %v331_v50, 0.0  ;;  %v313_v54 = vadd.f32 %v312_v52, %v264_v51 }
  0xcb   :  { %368 = vst [vmem:[%s789_s3 + $0x60] sm:$0xff] %v352_v53  ;;  %v345_v55 = vmax.f32 %v313_v54, 0.0 }
  0xcc   :  { %v283_v56 = vpop.f32.mrf.mxu2 }
  0xcd   :  { %361 = vst [vmem:[%s789_s3 + $0x28] sm:$0xff] %v345_v55  ;;  %v284_v57 = vadd.f32 %v720_v0, %v283_v56  ;;  %v332_v58 = vpop.f32.mrf.mxu3 }
  0xce   :  { %v266_v59 = vpop.f32.mrf.mxu0 }
  0xcf   :  { %v333_v60 = vadd.f32 %v332_v58, %v284_v57  ;;  %v267_v61 = vadd.f32 %v720_v0, %v266_v59  ;;  %v315_v62 = vpop.f32.mrf.mxu1 }
  0xd1   :  { %v353_v63 = vmax.f32 %v333_v60, 0.0  ;;  %v316_v1 = vadd.f32 %v315_v62, %v267_v61 }
  0xd3   :  { %369 = vst [vmem:[%s789_s3 + $0x68] sm:$0xff] %v353_v63  ;;  %v346_v2 = vmax.f32 %v316_v1, 0.0 }
  0xd4   :  { %v286_v3 = vpop.f32.mrf.mxu2 }
  0xd5   :  { %362 = vst [vmem:[%s789_s3 + $0x30] sm:$0xff] %v346_v2  ;;  %v287_v4 = vadd.f32 %v720_v0, %v286_v3  ;;  %v335_v5 = vpop.f32.mrf.mxu3 }
  0xd6   :  { %v268_v6 = vpop.f32.mrf.mxu0 }
  0xd7   :  { %v336_v7 = vadd.f32 %v335_v5, %v287_v4  ;;  %v269_v8 = vadd.f32 %v720_v0, %v268_v6  ;;  %v317_v9 = vpop.f32.mrf.mxu1 }
  0xd9   :  { %v354_v10 = vmax.f32 %v336_v7, 0.0  ;;  %v318_v11 = vadd.f32 %v317_v9, %v269_v8 }
  0xdb   :  { %370 = vst [vmem:[%s789_s3 + $0x70] sm:$0xff] %v354_v10  ;;  %v347_v12 = vmax.f32 %v318_v11, 0.0 }
  0xdc   :  { %v288_v13 = vpop.f32.mrf.mxu2 }
  0xdd   :  { %363 = vst [vmem:[%s789_s3 + $0x38] sm:$0xff] %v347_v12  ;;  %v289_v14 = vadd.f32 %v720_v0, %v288_v13  ;;  %v337_v15 = vpop.f32.mrf.mxu3 }
  0xdf   :  { %v338_v16 = vadd.f32 %v337_v15, %v289_v14 }
  0xe1   :  { %v355_v17 = vmax.f32 %v338_v16, 0.0 }
  0xe3   :  { %371 = vst [vmem:[%s789_s3 + $0x78] sm:$0xff] %v355_v17 }

// kernel: facenet_forward.12
= control target key start
LH: loop header
LB: loop body
LE: loop exit
PB: predicated region body
PF: predicated region fallthrough
CT: control target
= control target key end

     0   :  { %vm123_vm0 = vcmask 1043456   ;;  %vm98_vm1 = vcmask 64512   ;;  %s717_s4 = inlined_call_operand.vmem [shape: bf16[8,128], index: 4, kind: input, shape index: {}]   ;;  %s718_s3 = inlined_call_operand.vmem [shape: bf16[8,128], index: 3, kind: input, shape index: {}]   ;;  %s719_s2 = inlined_call_operand.vmem [shape: bf16[128,8], index: 2, kind: input, shape index: {}]   ;;  %s720_s1 = inlined_call_operand.vmem [shape: bf16[128,8], index: 1, kind: input, shape index: {}]   ;;  %s721_s5 = inlined_call_operand.vmem [shape: f32[1,128], index: 5, kind: input, shape index: {}]   ;;  %s722_s0 = inlined_call_operand.vmem [shape: f32[128,128], index: 0, kind: input, shape index: {}]   ;;  %s723_s6 = inlined_call_operand.vmem [shape: f32[128,128], index: 6, kind: output, shape index: {}]  }
   0x1   :  { %v57_v0 = vld [vmem:[%s717_s4] sm:$0xf]  ;;  %v485_v8 = vld [vmem:[%s719_s2 + $0x8] sm:$0xff]  ;;  %v486_v12 = vld [vmem:[%s719_s2 + $0x10] sm:$0xff] }
   0x2   :  { %v40_v1 = vld [vmem:[%s718_s3] sm:$0xf]  ;;  %v125_v2 = vsel %vm123_vm0, %v57_v0, 0  ;;  %v489_v9 = vld [vmem:[%s719_s2 + $0x28] sm:$0xff]  ;;  %v490_v13 = vld [vmem:[%s719_s2 + $0x30] sm:$0xff] }
   0x3   :  { %v241_v3 = vsel %vm123_vm0, %v40_v1, 0  ;;  %v484_v4 = vld [vmem:[%s719_s2] sm:$0xff]  ;;  %134 = vmatpush.bf16.msra.mxu0 %v125_v2  ;;  %492 = vmatpush.bf16.msra.mxu2 %v125_v2  ;;  %v477_v10 = vld [vmem:[%s720_s1 + $0x8] sm:$0xff]  ;;  %v478_v14 = vld [vmem:[%s720_s1 + $0x10] sm:$0xff] }
   0x4   :  { %v488_v5 = vld [vmem:[%s719_s2 + $0x20] sm:$0xff]  ;;  %250 = vmatpush.bf16.msra.mxu1 %v241_v3  ;;  %493 = vmatpush.bf16.msra.mxu3 %v241_v3  ;;  %v481_v11 = vld [vmem:[%s720_s1 + $0x28] sm:$0xff]  ;;  %v482_v15 = vld [vmem:[%s720_s1 + $0x30] sm:$0xff] }
   0x5   :  { %v476_v6 = vld [vmem:[%s720_s1] sm:$0xff]  ;;  %v487_v16 = vld [vmem:[%s719_s2 + $0x18] sm:$0xff]  ;;  %v313_v39 = vld [vmem:[%s722_s0 + $0x8] sm:$0xff] }
   0x6   :  { %v480_v7 = vld [vmem:[%s720_s1 + $0x20] sm:$0xff]  ;;  %428 = vmatmul.msk.bf16.vlgmr.msra.gmra.mxu0 %vm98_vm1, %v484_v4  ;;  %432 = vmatmul.msk.bf16.vlgmr.msra.gmra.mxu2 %vm98_vm1, %v488_v5  ;;  %v491_v17 = vld [vmem:[%s719_s2 + $0x38] sm:$0xff]  ;;  %v321_v52 = vld [vmem:[%s722_s0 + $0x48] sm:$0xff] }
   0x7   :  { %468 = vmatmul.msk.bf16.vlgmr.msra.gmra.mxu1 %vm98_vm1, %v476_v6  ;;  %472 = vmatmul.msk.bf16.vlgmr.msra.gmra.mxu3 %vm98_vm1, %v480_v7  ;;  %v479_v18 = vld [vmem:[%s720_s1 + $0x18] sm:$0xff]  ;;  %v603_v21 = vld [vmem:[%s721_s5] ss:$0 sm:$0xff]  ;;  %v314_v55 = vld [vmem:[%s722_s0 + $0x10] sm:$0xff] }
   0x8   :  { %v483_v19 = vld [vmem:[%s720_s1 + $0x38] sm:$0xff]  ;;  %v312_v25 = vld [vmem:[%s722_s0] sm:$0xff]  ;;  %v322_v4 = vld [vmem:[%s722_s0 + $0x50] sm:$0xff] }
   0x9   :  { %v320_v36 = vld [vmem:[%s722_s0 + $0x40] sm:$0xff]  ;;  %v315_v7 = vld [vmem:[%s722_s0 + $0x18] sm:$0xff] }
  0x16   :  { %429 = vmatmul.msk.bf16.gmra.mxu0 %vm98_vm1, %v485_v8  ;;  %433 = vmatmul.msk.bf16.gmra.mxu2 %vm98_vm1, %v489_v9 }
  0x17   :  { %469 = vmatmul.msk.bf16.gmra.mxu1 %vm98_vm1, %v477_v10  ;;  %473 = vmatmul.msk.bf16.gmra.mxu3 %vm98_vm1, %v481_v11 }
  0x26   :  { %430 = vmatmul.msk.bf16.gmra.mxu0 %vm98_vm1, %v486_v12  ;;  %434 = vmatmul.msk.bf16.gmra.mxu2 %vm98_vm1, %v490_v13 }
  0x27   :  { %470 = vmatmul.msk.bf16.gmra.mxu1 %vm98_vm1, %v478_v14  ;;  %474 = vmatmul.msk.bf16.gmra.mxu3 %vm98_vm1, %v482_v15 }
  0x36   :  { %431 = vmatmul.msk.bf16.gmra.mxu0 %vm98_vm1, %v487_v16  ;;  %435 = vmatmul.msk.bf16.gmra.mxu2 %vm98_vm1, %v491_v17 }
  0x37   :  { %471 = vmatmul.msk.bf16.gmra.mxu1 %vm98_vm1, %v479_v18  ;;  %475 = vmatmul.msk.bf16.gmra.mxu3 %vm98_vm1, %v483_v19 }
  0x83   :  { %v136_v20 = vpop.f32.mrf.mxu0 }
  0x84   :  { %v252_v22 = vpop.f32.mrf.mxu1 }
  0x85   :  { %v253_v23 = vadd.f32 %v252_v22, %v136_v20  ;;  %v323_v20 = vld [vmem:[%s722_s0 + $0x58] sm:$0xff] }
  0x87   :  { %v296_v24 = vadd.f32 %v603_v21, %v253_v23 }
  0x89   :  { %v328_v26 = vmul.f32 0.17, %v296_v24  ;;  %v156_v27 = vpop.f32.mrf.mxu2  ;;  %v316_v24 = vld [vmem:[%s722_s0 + $0x20] sm:$0xff] }
  0x8a   :  { %v272_v28 = vpop.f32.mrf.mxu3 }
  0x8b   :  { %v344_v29 = vadd.f32 %v328_v26, %v312_v25  ;;  %v273_v30 = vadd.f32 %v272_v28, %v156_v27  ;;  %v138_v31 = vpop.f32.mrf.mxu0 }
  0x8c   :  { %v254_v32 = vpop.f32.mrf.mxu1 }
  0x8d   :  { %v360_v33 = vmax.f32 %v344_v29, 0.0  ;;  %v304_v34 = vadd.f32 %v603_v21, %v273_v30  ;;  %v255_v35 = vadd.f32 %v254_v32, %v138_v31 }
  0x8f   :  { %376 = vst [vmem:[%s723_s6] sm:$0xff] %v360_v33  ;;  %v336_v37 = vmul.f32 0.17, %v304_v34  ;;  %v297_v38 = vadd.f32 %v603_v21, %v255_v35 }
  0x91   :  { %v352_v40 = vadd.f32 %v336_v37, %v320_v36  ;;  %v329_v41 = vmul.f32 0.17, %v297_v38  ;;  %v158_v42 = vpop.f32.mrf.mxu2  ;;  %v324_v37 = vld [vmem:[%s722_s0 + $0x60] sm:$0xff] }
  0x92   :  { %v274_v43 = vpop.f32.mrf.mxu3 }
  0x93   :  { %v368_v44 = vmax.f32 %v352_v40, 0.0  ;;  %v345_v45 = vadd.f32 %v329_v41, %v313_v39  ;;  %v275_v46 = vadd.f32 %v274_v43, %v158_v42  ;;  %v141_v47 = vpop.f32.mrf.mxu0  ;;  %v317_v40 = vld [vmem:[%s722_s0 + $0x28] sm:$0xff] }
  0x94   :  { %v257_v48 = vpop.f32.mrf.mxu1 }
  0x95   :  { %384 = vst [vmem:[%s723_s6 + $0x40] sm:$0xff] %v368_v44  ;;  %v361_v49 = vmax.f32 %v345_v45, 0.0  ;;  %v305_v50 = vadd.f32 %v603_v21, %v275_v46  ;;  %v258_v51 = vadd.f32 %v257_v48, %v141_v47 }
  0x97   :  { %377 = vst [vmem:[%s723_s6 + $0x8] sm:$0xff] %v361_v49  ;;  %v337_v53 = vmul.f32 0.17, %v305_v50  ;;  %v298_v54 = vadd.f32 %v603_v21, %v258_v51 }
  0x99   :  { %v353_v56 = vadd.f32 %v337_v53, %v321_v52  ;;  %v330_v57 = vmul.f32 0.17, %v298_v54  ;;  %v161_v58 = vpop.f32.mrf.mxu2  ;;  %v325_v53 = vld [vmem:[%s722_s0 + $0x68] sm:$0xff] }
  0x9a   :  { %v277_v59 = vpop.f32.mrf.mxu3 }
  0x9b   :  { %v369_v60 = vmax.f32 %v353_v56, 0.0  ;;  %v346_v61 = vadd.f32 %v330_v57, %v314_v55  ;;  %v278_v62 = vadd.f32 %v277_v59, %v161_v58  ;;  %v143_v63 = vpop.f32.mrf.mxu0  ;;  %v318_v56 = vld [vmem:[%s722_s0 + $0x30] sm:$0xff] }
  0x9c   :  { %v259_v0 = vpop.f32.mrf.mxu1 }
  0x9d   :  { %385 = vst [vmem:[%s723_s6 + $0x48] sm:$0xff] %v369_v60  ;;  %v362_v1 = vmax.f32 %v346_v61, 0.0  ;;  %v306_v2 = vadd.f32 %v603_v21, %v278_v62  ;;  %v260_v3 = vadd.f32 %v259_v0, %v143_v63 }
  0x9f   :  { %378 = vst [vmem:[%s723_s6 + $0x10] sm:$0xff] %v362_v1  ;;  %v338_v5 = vmul.f32 0.17, %v306_v2  ;;  %v299_v6 = vadd.f32 %v603_v21, %v260_v3 }
  0xa1   :  { %v354_v8 = vadd.f32 %v338_v5, %v322_v4  ;;  %v331_v9 = vmul.f32 0.17, %v299_v6  ;;  %v163_v10 = vpop.f32.mrf.mxu2  ;;  %v326_v5 = vld [vmem:[%s722_s0 + $0x70] sm:$0xff] }
  0xa2   :  { %v279_v11 = vpop.f32.mrf.mxu3 }
  0xa3   :  { %v370_v12 = vmax.f32 %v354_v8, 0.0  ;;  %v347_v13 = vadd.f32 %v331_v9, %v315_v7  ;;  %v280_v14 = vadd.f32 %v279_v11, %v163_v10  ;;  %v146_v15 = vpop.f32.mrf.mxu0  ;;  %v319_v8 = vld [vmem:[%s722_s0 + $0x38] sm:$0xff] }
  0xa4   :  { %v262_v16 = vpop.f32.mrf.mxu1 }
  0xa5   :  { %386 = vst [vmem:[%s723_s6 + $0x50] sm:$0xff] %v370_v12  ;;  %v363_v17 = vmax.f32 %v347_v13, 0.0  ;;  %v307_v18 = vadd.f32 %v603_v21, %v280_v14  ;;  %v263_v19 = vadd.f32 %v262_v16, %v146_v15 }
  0xa7   :  { %379 = vst [vmem:[%s723_s6 + $0x18] sm:$0xff] %v363_v17  ;;  %v339_v22 = vmul.f32 0.17, %v307_v18  ;;  %v300_v23 = vadd.f32 %v603_v21, %v263_v19  ;;  %v327_v18 = vld [vmem:[%s722_s0 + $0x78] sm:$0xff] }
  0xa9   :  { %v355_v25 = vadd.f32 %v339_v22, %v323_v20  ;;  %v332_v26 = vmul.f32 0.17, %v300_v23  ;;  %v166_v27 = vpop.f32.mrf.mxu2 }
  0xaa   :  { %v282_v28 = vpop.f32.mrf.mxu3 }
  0xab   :  { %v371_v29 = vmax.f32 %v355_v25, 0.0  ;;  %v348_v30 = vadd.f32 %v332_v26, %v316_v24  ;;  %v283_v31 = vadd.f32 %v282_v28, %v166_v27  ;;  %v148_v32 = vpop.f32.mrf.mxu0 }
  0xac   :  { %v264_v33 = vpop.f32.mrf.mxu1 }
  0xad   :  { %387 = vst [vmem:[%s723_s6 + $0x58] sm:$0xff] %v371_v29  ;;  %v364_v34 = vmax.f32 %v348_v30, 0.0  ;;  %v308_v35 = vadd.f32 %v603_v21, %v283_v31  ;;  %v265_v36 = vadd.f32 %v264_v33, %v148_v32 }
  0xaf   :  { %380 = vst [vmem:[%s723_s6 + $0x20] sm:$0xff] %v364_v34  ;;  %v340_v38 = vmul.f32 0.17, %v308_v35  ;;  %v301_v39 = vadd.f32 %v603_v21, %v265_v36 }
  0xb1   :  { %v356_v41 = vadd.f32 %v340_v38, %v324_v37  ;;  %v333_v42 = vmul.f32 0.17, %v301_v39  ;;  %v168_v43 = vpop.f32.mrf.mxu2 }
  0xb2   :  { %v284_v44 = vpop.f32.mrf.mxu3 }
  0xb3   :  { %v372_v45 = vmax.f32 %v356_v41, 0.0  ;;  %v349_v46 = vadd.f32 %v333_v42, %v317_v40  ;;  %v285_v47 = vadd.f32 %v284_v44, %v168_v43  ;;  %v151_v48 = vpop.f32.mrf.mxu0 }
  0xb4   :  { %v267_v49 = vpop.f32.mrf.mxu1 }
  0xb5   :  { %388 = vst [vmem:[%s723_s6 + $0x60] sm:$0xff] %v372_v45  ;;  %v365_v50 = vmax.f32 %v349_v46, 0.0  ;;  %v309_v51 = vadd.f32 %v603_v21, %v285_v47  ;;  %v268_v52 = vadd.f32 %v267_v49, %v151_v48 }
  0xb7   :  { %381 = vst [vmem:[%s723_s6 + $0x28] sm:$0xff] %v365_v50  ;;  %v341_v54 = vmul.f32 0.17, %v309_v51  ;;  %v302_v55 = vadd.f32 %v603_v21, %v268_v52 }
  0xb9   :  { %v357_v57 = vadd.f32 %v341_v54, %v325_v53  ;;  %v334_v58 = vmul.f32 0.17, %v302_v55  ;;  %v171_v59 = vpop.f32.mrf.mxu2 }
  0xba   :  { %v287_v60 = vpop.f32.mrf.mxu3 }
  0xbb   :  { %v373_v61 = vmax.f32 %v357_v57, 0.0  ;;  %v350_v62 = vadd.f32 %v334_v58, %v318_v56  ;;  %v288_v63 = vadd.f32 %v287_v60, %v171_v59  ;;  %v153_v0 = vpop.f32.mrf.mxu0 }
  0xbc   :  { %v269_v1 = vpop.f32.mrf.mxu1 }
  0xbd   :  { %389 = vst [vmem:[%s723_s6 + $0x68] sm:$0xff] %v373_v61  ;;  %v366_v2 = vmax.f32 %v350_v62, 0.0  ;;  %v310_v3 = vadd.f32 %v603_v21, %v288_v63  ;;  %v270_v4 = vadd.f32 %v269_v1, %v153_v0 }
  0xbf   :  { %382 = vst [vmem:[%s723_s6 + $0x30] sm:$0xff] %v366_v2  ;;  %v342_v6 = vmul.f32 0.17, %v310_v3  ;;  %v303_v7 = vadd.f32 %v603_v21, %v270_v4 }
  0xc1   :  { %v358_v9 = vadd.f32 %v342_v6, %v326_v5  ;;  %v335_v10 = vmul.f32 0.17, %v303_v7  ;;  %v173_v11 = vpop.f32.mrf.mxu2 }
  0xc2   :  { %v289_v12 = vpop.f32.mrf.mxu3 }
  0xc3   :  { %v374_v13 = vmax.f32 %v358_v9, 0.0  ;;  %v351_v14 = vadd.f32 %v335_v10, %v319_v8  ;;  %v290_v15 = vadd.f32 %v289_v12, %v173_v11 }
  0xc5   :  { %390 = vst [vmem:[%s723_s6 + $0x70] sm:$0xff] %v374_v13  ;;  %v367_v16 = vmax.f32 %v351_v14, 0.0  ;;  %v311_v17 = vadd.f32 %v603_v21, %v290_v15 }
  0xc7   :  { %383 = vst [vmem:[%s723_s6 + $0x38] sm:$0xff] %v367_v16  ;;  %v343_v19 = vmul.f32 0.17, %v311_v17 }
  0xc9   :  { %v359_v20 = vadd.f32 %v343_v19, %v327_v18 }
  0xcb   :  { %v375_v22 = vmax.f32 %v359_v20, 0.0 }
  0xcd   :  { %391 = vst [vmem:[%s723_s6 + $0x78] sm:$0xff] %v375_v22 }

// kernel: facenet_forward.13
= control target key start
LH: loop header
LB: loop body
LE: loop exit
PB: predicated region body
PF: predicated region fallthrough
CT: control target
= control target key end

     0   :  { %vm23_vm0 = vcmask 261120   ;;  %v267_v6 = vmov 25.0   ;;  %vm29_vm1 = vcmask 253952   ;;  %s384_s0 = inlined_call_operand.vmem [shape: f32[2,25,32], index: 0, kind: input, shape index: {}]   ;;  %s385_s1 = inlined_call_operand.vmem [shape: f32[32,512], index: 1, kind: input, shape index: {}]   ;;  %s386_s2 = inlined_call_operand.vmem [shape: f32[1,512], index: 2, kind: input, shape index: {}]   ;;  %s387_s3 = inlined_call_operand.hbm [shape: f32[2,512], index: 3, kind: output, shape index: {}]  }
   0x1   :  { %v74_v0 = vld [vmem:[%s385_s1 + $0x70] sm:$0xff]  ;;  %v75_v2 = vld [vmem:[%s385_s1 + $0x78] sm:$0xff]  ;;  %v72_v3 = vld [vmem:[%s385_s1 + $0x60] sm:$0xff]  ;;  %237 = vrcp.f32 %v267_v6 }
   0x2   :  { %v70_v1 = vld [vmem:[%s385_s1 + $0x50] sm:$0xff]  ;;  %144 = vmatpush.msra.mxu2 %v74_v0  ;;  %164 = vmatpush.msra.mxu3 %v75_v2  ;;  %v73_v4 = vld [vmem:[%s385_s1 + $0x68] sm:$0xff]  ;;  %v71_v7 = vld [vmem:[%s385_s1 + $0x58] sm:$0xff] }
   0x3   :  { %v66_v5 = vld [vmem:[%s385_s1 + $0x30] sm:$0xff]  ;;  %104 = vmatpush.msra.mxu0 %v72_v3  ;;  %124 = vmatpush.msra.mxu1 %v73_v4  ;;  %v68_v8 = vld [vmem:[%s385_s1 + $0x40] sm:$0xff]  ;;  %v69_v9 = vld [vmem:[%s385_s1 + $0x48] sm:$0xff] }
   0x4   :  { %145 = vmatpush.msra.mxu2 %v70_v1  ;;  %165 = vmatpush.msra.mxu3 %v71_v7  ;;  %v62_v10 = vld [vmem:[%s385_s1 + $0x10] sm:$0xff]  ;;  %v67_v11 = vld [vmem:[%s385_s1 + $0x38] sm:$0xff]  ;;  %v15_v12 = vld [vmem:[%s384_s0] sm:$0xff] }
   0x5   :  { %105 = vmatpush.msra.mxu0 %v68_v8  ;;  %125 = vmatpush.msra.mxu1 %v69_v9  ;;  %v16_v13 = vld [vmem:[%s384_s0 + $0x8] sm:$0xff]  ;;  %v17_v14 = vld [vmem:[%s384_s0 + $0x10] sm:$0xff]  ;;  %v18_v15 = vld [vmem:[%s384_s0 + $0x18] sm:$0x1]  ;;  %v24_v16 = vsel %vm23_vm0, %v15_v12, 0.0 }
   0x6   :  { %146 = vmatpush.msra.mxu2 %v66_v5  ;;  %166 = vmatpush.msra.mxu3 %v67_v11  ;;  %v19_v17 = vld [vmem:[%s384_s0 + $0x20] sm:$0xff]  ;;  %v20_v18 = vld [vmem:[%s384_s0 + $0x28] sm:$0xff]  ;;  %v21_v19 = vld [vmem:[%s384_s0 + $0x30] sm:$0xff]  ;;  %v25_v20 = vsel %vm23_vm0, %v16_v13, 0.0  ;;  %v27_v21 = vsel %vm23_vm0, %v17_v14, 0.0  ;;  %v30_v29 = vsel %vm29_vm1, %v18_v15, 0.0 }
   0x7   :  { %v22_v22 = vld [vmem:[%s384_s0 + $0x38] sm:$0x1]  ;;  %v26_v23 = vadd.f32 %v25_v20, %v24_v16  ;;  %v38_v24 = vsel %vm23_vm0, %v19_v17, 0.0  ;;  %v39_v25 = vsel %vm23_vm0, %v20_v18, 0.0  ;;  %v41_v26 = vsel %vm23_vm0, %v21_v19, 0.0  ;;  %v64_v27 = vld [vmem:[%s385_s1 + $0x20] sm:$0xff]  ;;  %v238_v28 = vpop.eup %237 }
   0x8   :  { %147 = vmatpush.msra.mxu2 %v62_v10  ;;  %v40_v30 = vadd.f32 %v39_v25, %v38_v24  ;;  %106 = vmatpush.msra.mxu0 %v64_v27  ;;  %v65_v31 = vld [vmem:[%s385_s1 + $0x28] sm:$0xff]  ;;  %v63_v32 = vld [vmem:[%s385_s1 + $0x18] sm:$0xff]  ;;  %v60_v33 = vld [vmem:[%s385_s1] sm:$0xff]  ;;  %v43_v35 = vsel %vm29_vm1, %v22_v22, 0.0  ;;  %v52_v36 = vmul.f32 25.0, %v238_v28 }
   0x9   :  { %v28_v34 = vadd.f32 %v27_v21, %v26_v23  ;;  %126 = vmatpush.msra.mxu1 %v65_v31  ;;  %167 = vmatpush.msra.mxu3 %v63_v32  ;;  %v61_v37 = vld [vmem:[%s385_s1 + $0x8] sm:$0xff] }
   0xa   :  { %8 = vsyncpa [#allocation3], 0  ;;  %v42_v38 = vadd.f32 %v41_v26, %v40_v30  ;;  %107 = vmatpush.msra.mxu0 %v60_v33  ;;  %v53_v40 = vsub.f32 1.0, %v52_v36  ;;  %vm56_vm2 = vweird.f32 %v238_v28  ;;  %vm88_vm3 = vcmask 1041409   ;;  %v76_v60 = vld [vmem:[%s386_s2] sm:$0xf] }
   0xb   :  { %v31_v39 = vadd.f32 %v30_v29, %v28_v34  ;;  %127 = vmatpush.msra.mxu1 %v61_v37  ;;  %v78_v61 = vperm.slane %v76_v60, 0  ;;  %v79_v62 = vperm.slane %v76_v60, 1  ;;  %vm176_vm4 = vcmask 1041408   ;;  %s268_s2 = smov [#allocation2]   ;;  %s222_s9 = sshll.u32 %s387_s3, 4  ;;  %s223_s9 = int_to_ptr.hbm [resolvable:$true] %s222_s9 }
   0xc   :  { %v44_v41 = vadd.f32 %v43_v35, %v42_v38  ;;  %v54_v44 = vmul.f32 %v238_v28, %v53_v40  ;;  %v80_v3 = vperm.slane %v76_v60, 2  ;;  %v81_v4 = vperm.slane %v76_v60, 3  ;;  %s220_s6 = sshll.u32 %s268_s2, 4  ;;  %s221_s6 = int_to_ptr.vmem [resolvable:$true] %s220_s6 }
   0xd   :  { %v32_v42 = vrot.slane %v31_v39, 4  ;;  %vm209_vm8 = vcmask 1045508   ;;  %vm211_vm9 = vcmask 1043456  }
   0xe   :  { %v45_v43 = vrot.slane %v44_v41, 4  ;;  %v55_v49 = vadd.f32 %v238_v28, %v54_v44 }
   0xf   :  { %v33_v45 = vadd.f32 %v32_v42, %v31_v39 }
  0x10   :  { %v46_v46 = vadd.f32 %v45_v43, %v44_v41  ;;  %v57_v54 = vsel %vm56_vm2, %v238_v28, %v55_v49 }
  0x11   :  { %v34_v47 = vrot.slane %v33_v45, 2 }
  0x12   :  { %v47_v48 = vrot.slane %v46_v46, 2 }
  0x13   :  { %v35_v50 = vadd.f32 %v34_v47, %v33_v45 }
  0x14   :  { %v48_v51 = vadd.f32 %v47_v48, %v46_v46 }
  0x15   :  { %v36_v52 = vrot.slane %v35_v50, 1 }
  0x16   :  { %v49_v53 = vrot.slane %v48_v51, 1 }
  0x17   :  { %v37_v55 = vadd.f32 %v36_v52, %v35_v50 }
  0x18   :  { %v50_v56 = vadd.f32 %v49_v53, %v48_v51 }
  0x19   :  { %v58_v57 = vmul.f32 %v57_v54, %v37_v55 }
  0x1a   :  { %v59_v58 = vmul.f32 %v57_v54, %v50_v56 }
  0x1c   :  { %v89_v59 = vsel %vm88_vm3, %v59_v58, %v58_v57 }
  0x1d   :  { %233 = vmatmul.msk.f32.vlgmr.msra.gmra.mxu2 %vm23_vm0, %v89_v59  ;;  %234 = vmatmul.msk.f32.vlgmr.msra.gmra.mxu3 %vm23_vm0, %v89_v59 }
  0x1e   :  { %231 = vmatmul.msk.f32.vlgmr.msra.gmra.mxu0 %vm23_vm0, %v89_v59  ;;  %232 = vmatmul.msk.f32.vlgmr.msra.gmra.mxu1 %vm23_vm0, %v89_v59 }
  0x9b   :  { %v109_v63 = vpop.f32.mrf.mxu0  ;;  %v129_v0 = vpop.f32.mrf.mxu1 }
  0x9c   :  { %v110_v1 = vadd.f32 %v109_v63, %v78_v61  ;;  %v130_v2 = vadd.f32 %v129_v0, %v79_v62 }
  0x9e   :  { %v172_v5 = vmul.f32 %v110_v1, %v110_v1  ;;  %v173_v6 = vmul.f32 %v130_v2, %v130_v2 }
  0xa0   :  { %v177_v7 = vsel %vm176_vm4, %v172_v5, 0.0  ;;  %v178_v8 = vsel %vm176_vm4, %v173_v6, 0.0  ;;  %v149_v9 = vpop.f32.mrf.mxu2  ;;  %v169_v10 = vpop.f32.mrf.mxu3 }
  0xa1   :  { %v150_v11 = vadd.f32 %v149_v9, %v80_v3  ;;  %v170_v12 = vadd.f32 %v169_v10, %v81_v4  ;;  %v179_v13 = vadd.f32 %v178_v8, %v177_v7 }
  0xa3   :  { %v174_v14 = vmul.f32 %v150_v11, %v150_v11  ;;  %v175_v15 = vmul.f32 %v170_v12, %v170_v12 }
  0xa5   :  { %v180_v16 = vsel %vm176_vm4, %v174_v14, 0.0  ;;  %v182_v17 = vsel %vm176_vm4, %v175_v15, 0.0 }
  0xa6   :  { %v181_v18 = vadd.f32 %v180_v16, %v179_v13 }
  0xa8   :  { %v183_v19 = vadd.f32 %v182_v17, %v181_v18 }
  0xaa   :  { %184 = vadd.xlane.f32.xlu0 %v183_v19 }
 0x11d   :  { %v185_v20 = vpop.xlane.xlu0 %184 }
 0x11e   :  { %v186_v21 = vmax.f32 %v185_v20, 1e-24 }
 0x120   :  { %239 = vrsqrt.f32 %v186_v21  ;;  %vm193_vm6 = vweird.f32 %v186_v21 }
 0x126   :  { %v240_v22 = vpop.eup %239 }
 0x127   :  { %v188_v23 = vmul.f32 %v240_v22, %v186_v21  ;;  %vm194_vm5 = vweird.f32 %v240_v22 }
 0x128   :  { %vm195_vm7 = vmor %vm193_vm6, %vm194_vm5 }
 0x129   :  { %v189_v24 = vmul.f32 %v240_v22, %v188_v23 }
 0x12b   :  { %v190_v25 = vmul.f32 0.5, %v189_v24 }
 0x12d   :  { %v191_v26 = vsub.f32 1.5, %v190_v25 }
 0x12f   :  { %v192_v27 = vmul.f32 %v240_v22, %v191_v26 }
 0x131   :  { %v196_v28 = vsel %vm195_vm7, %v240_v22, %v192_v27 }
 0x132   :  { %v198_v29 = vmul.f32 %v196_v28, %v130_v2  ;;  %v199_v30 = vmul.f32 %v196_v28, %v150_v11  ;;  %v200_v31 = vmul.f32 %v196_v28, %v170_v12  ;;  %v197_v32 = vmul.f32 %v196_v28, %v110_v1 }
 0x134   :  { %v205_v33 = vrot.slane %v198_v29, 6  ;;  %v206_v34 = vrot.slane %v199_v30, 4  ;;  %v207_v35 = vrot.slane %v200_v31, 2 }
 0x136   :  { %v208_v36 = vsel %vm176_vm4, %v197_v32, %v205_v33  ;;  %v210_v37 = vsel %vm209_vm8, %v206_v34, %v207_v35 }
 0x137   :  { %v212_v38 = vsel %vm211_vm9, %v208_v36, %v210_v37 }
 0x138   :  { %214 = vst [vmem:[#allocation2] sm:$0xff] %v212_v38 }
 0x139   :  { %225 = dma.vmem_to_hbm [thread:$0]  %s221_s6, 128, %s223_s9, [#allocation3]  }
 0x13a   :  { %265 = dma.done.wait [#allocation3], 128  }
 0x13b   :  { %266 = vsyncadd [#allocation3], 4294967168 }
 0x13c   :  { %230 = vsyncpa [#allocation3], 1 }

</bundles_post_ra>
